<compile_context>
chip_gen: v7x
topology: tpu7x:2x2x1
jax: 0.10.0
libtpu: 0.0.40
codegen_flags: <defaults>
</compile_context>

<pallas_src>
import jax
import jax.numpy as jnp
from jax.experimental import pallas as pl
from jax.experimental.pallas import tpu as pltpu


def _gather_embed_kernel(idx_ref, idf_ref, row_ref, out_ref, acc_ref):
    # idx_ref : (B, S) int32 SMEM  -- scalar-prefetch token ids (drive the table gather)
    # idf_ref : (1, 1, S) f32 VMEM -- idf row for batch b (resident across the s axis)
    # row_ref : (1, 1, D) f32 VMEM -- E[inputs[b, s]], gathered by the table BlockSpec
    # out_ref : (1, 1, D) f32 VMEM -- output row for batch b (resident across the s axis)
    # acc_ref : (1, 1, D) f32 VMEM scratch accumulator
    del idx_ref  # only needed by the index_maps
    s = pl.program_id(1)

    @pl.when(s == 0)
    def _init():
        acc_ref[...] = jnp.zeros_like(acc_ref)

    # Running VPU accumulate of the gathered embedding row.
    acc_ref[...] += row_ref[...]

    @pl.when(s == pl.num_programs(1) - 1)
    def _finalize():
        sum_idf = jnp.sum(idf_ref[...])  # per-batch scalar, computed once per b
        out_ref[...] = (acc_ref[...] * sum_idf).astype(out_ref.dtype)


def embedding_forward(inputs, idf, table):
    """inputs: (B, S) int32, idf: (B, S) float32, table: (V, D) float32 -> (B, D)."""
    B, S = inputs.shape
    V, D = table.shape

    idf3 = idf.astype(jnp.float32).reshape(B, 1, S)
    table3 = table.astype(jnp.float32).reshape(V, 1, D)

    out3 = pl.pallas_call(
        _gather_embed_kernel,
        out_shape=jax.ShapeDtypeStruct((B, 1, D), jnp.float32),
        grid_spec=pltpu.PrefetchScalarGridSpec(
            num_scalar_prefetch=1,           # token ids land in SMEM before the grid runs
            grid=(B, S),                     # batch (parallel) x sequence (reduction)
            in_specs=[
                # idf row for the current batch; same block for every s (stays resident).
                pl.BlockSpec((1, 1, S), lambda b, s, idx: (b, 0, 0)),
                # True gather: row index comes from the prefetched token ids.
                pl.BlockSpec((1, 1, D), lambda b, s, idx: (idx[b, s], 0, 0)),
            ],
            out_specs=pl.BlockSpec((1, 1, D), lambda b, s, idx: (b, 0, 0)),
            scratch_shapes=[pltpu.VMEM((1, 1, D), jnp.float32)],
        ),
        compiler_params=pltpu.CompilerParams(
            dimension_semantics=("parallel", "arbitrary"),
        ),
    )(inputs.astype(jnp.int32), idf3, table3)

    return out3.reshape(B, D)


def reference_forward(inputs, idf, table):
    emb = table[inputs]                                   # (B, S, D)
    sum_idf = jnp.sum(idf, axis=1, keepdims=True)         # (B, 1)
    return jnp.sum(sum_idf[:, :, None] * emb, axis=1)     # (B, D)


if __name__ == "__main__":
    B, S, V, D = 2, 8, 64, 32

    key = jax.random.PRNGKey(0)
    k_tab, k_idx, k_idf = jax.random.split(key, 3)

    # deterministic "pretrained" embedding weights (frozen)
    table = jax.random.normal(k_tab, (V, D), dtype=jnp.float32)
    inputs = jax.random.randint(k_idx, (B, S), 0, V, dtype=jnp.int32)
    idf = jax.random.uniform(k_idf, (B, S), dtype=jnp.float32)

    out = embedding_forward(inputs, idf, table)
    jax.block_until_ready(out)

    ref = reference_forward(inputs, idf, table)
    assert out.shape == (B, D)
    assert jnp.allclose(out, ref, atol=1e-4, rtol=1e-4)

    print("KERNEL_OK")
</pallas_src>

<mosaic_0001>
module attributes {stable_mosaic.version = 11 : i64} {
  func.func @_gather_embed_kernel(%arg0: i32, %arg1: i32, %arg2: memref<2x8xi32, #tpu.memory_space<smem>>, %arg3: memref<1x1x8xf32, #tpu.memory_space<vmem>>, %arg4: memref<1x1x32xf32, #tpu.memory_space<vmem>>, %arg5: memref<1x1x32xf32, #tpu.memory_space<vmem>>, %arg6: memref<1x1x32xf32, #tpu.memory_space<vmem>>) attributes {dimension_semantics = [#tpu.dimension_semantics<parallel>, #tpu.dimension_semantics<arbitrary>], iteration_bounds = array<i64: 2, 8>, scalar_prefetch = 1 : i64, scratch_operands = 1 : i64, tpu.core_type = #tpu.core_type<tc>, window_params = [{transform_indices = @transform_0, window_bounds = array<i64: 1, 1, 8>}, {transform_indices = @transform_1, window_bounds = array<i64: 1, 1, 32>}, {transform_indices = @transform_2, window_bounds = array<i64: 1, 1, 32>}]} {
    %c0_i32 = arith.constant 0 : i32
    %0 = arith.cmpi eq, %arg1, %c0_i32 : i32
    %1 = arith.extui %0 : i1 to i32
    %c0_i32_0 = arith.constant 0 : i32
    %2 = arith.cmpi ne, %1, %c0_i32_0 : i32
    scf.if %2 {
      %cst = arith.constant 0.000000e+00 : f32
      %10 = vector.broadcast %cst : f32 to vector<1x1x32xf32>
      %c0_10 = arith.constant 0 : index
      %c0_11 = arith.constant 0 : index
      %c0_12 = arith.constant 0 : index
      %11 = vector.load %arg6[%c0_10, %c0_11, %c0_12] : memref<1x1x32xf32, #tpu.memory_space<vmem>>, vector<1x1x32xf32>
      tpu.vector_store %arg6[%c0_10, %c0_11, %c0_12], %10 {strides = array<i32>} : memref<1x1x32xf32, #tpu.memory_space<vmem>>, vector<1x1x32xf32>,
    } else {
    }
    %c0 = arith.constant 0 : index
    %c0_1 = arith.constant 0 : index
    %c0_2 = arith.constant 0 : index
    %3 = vector.load %arg6[%c0, %c0_1, %c0_2] : memref<1x1x32xf32, #tpu.memory_space<vmem>>, vector<1x1x32xf32>
    %c0_3 = arith.constant 0 : index
    %c0_4 = arith.constant 0 : index
    %c0_5 = arith.constant 0 : index
    %4 = vector.load %arg4[%c0_3, %c0_4, %c0_5] : memref<1x1x32xf32, #tpu.memory_space<vmem>>, vector<1x1x32xf32>
    %5 = arith.addf %3, %4 : vector<1x1x32xf32>
    %c0_6 = arith.constant 0 : index
    %c0_7 = arith.constant 0 : index
    %c0_8 = arith.constant 0 : index
    %6 = vector.load %arg6[%c0_6, %c0_7, %c0_8] : memref<1x1x32xf32, #tpu.memory_space<vmem>>, vector<1x1x32xf32>
    tpu.vector_store %arg6[%c0_6, %c0_7, %c0_8], %5 {strides = array<i32>} : memref<1x1x32xf32, #tpu.memory_space<vmem>>, vector<1x1x32xf32>,
    %c7_i32 = arith.constant 7 : i32
    %7 = arith.cmpi eq, %arg1, %c7_i32 : i32
    %8 = arith.extui %7 : i1 to i32
    %c0_i32_9 = arith.constant 0 : i32
    %9 = arith.cmpi ne, %8, %c0_i32_9 : i32
    scf.if %9 {
      %c0_10 = arith.constant 0 : index
      %c0_11 = arith.constant 0 : index
      %c0_12 = arith.constant 0 : index
      %10 = vector.load %arg3[%c0_10, %c0_11, %c0_12] : memref<1x1x8xf32, #tpu.memory_space<vmem>>, vector<1x1x8xf32>
      %11 = vector.shape_cast %10 : vector<1x1x8xf32> to vector<1x1x1x8xf32>
      %cst = arith.constant dense<0.000000e+00> : vector<1xf32>
      %12 = vector.multi_reduction <add>, %11, %cst [1, 2, 3] : vector<1x1x1x8xf32> to vector<1xf32>
      %13 = vector.shape_cast %12 : vector<1xf32> to vector<1x1x1x1xf32>
      %14 = vector.extract %13[0, 0, 0, 0] : f32 from vector<1x1x1x1xf32>
      %c0_13 = arith.constant 0 : index
      %c0_14 = arith.constant 0 : index
      %c0_15 = arith.constant 0 : index
      %15 = vector.load %arg6[%c0_13, %c0_14, %c0_15] : memref<1x1x32xf32, #tpu.memory_space<vmem>>, vector<1x1x32xf32>
      %16 = vector.broadcast %14 : f32 to vector<1x1x32xf32>
      %17 = arith.mulf %15, %16 : vector<1x1x32xf32>
      %c0_16 = arith.constant 0 : index
      %c0_17 = arith.constant 0 : index
      %c0_18 = arith.constant 0 : index
      %18 = vector.load %arg5[%c0_16, %c0_17, %c0_18] : memref<1x1x32xf32, #tpu.memory_space<vmem>>, vector<1x1x32xf32>
      tpu.vector_store %arg5[%c0_16, %c0_17, %c0_18], %17 {strides = array<i32>} : memref<1x1x32xf32, #tpu.memory_space<vmem>>, vector<1x1x32xf32>,
    } else {
    }
    return
  }
  func.func @transform_0(%arg0: i32, %arg1: i32, %arg2: memref<2x8xi32, #tpu.memory_space<smem>>) -> (i32, i32, i32) {
    %c0_i32 = arith.constant 0 : i32
    %c0_i32_0 = arith.constant 0 : i32
    %c0_i32_1 = arith.constant 0 : i32
    return %arg0, %c0_i32, %c0_i32_0 : i32, i32, i32
  }
  func.func @transform_1(%arg0: i32, %arg1: i32, %arg2: memref<2x8xi32, #tpu.memory_space<smem>>) -> (i32, i32, i32) {
    %0 = arith.index_cast %arg0 : i32 to index
    %1 = arith.index_cast %arg1 : i32 to index
    %2 = memref.load %arg2[%0, %1] : memref<2x8xi32, #tpu.memory_space<smem>>
    %c0_i32 = arith.constant 0 : i32
    %c0_i32_0 = arith.constant 0 : i32
    %c0_i32_1 = arith.constant 0 : i32
    return %2, %c0_i32, %c0_i32_0 : i32, i32, i32
  }
  func.func @transform_2(%arg0: i32, %arg1: i32, %arg2: memref<2x8xi32, #tpu.memory_space<smem>>) -> (i32, i32, i32) {
    %c0_i32 = arith.constant 0 : i32
    %c0_i32_0 = arith.constant 0 : i32
    %c0_i32_1 = arith.constant 0 : i32
    return %arg0, %c0_i32, %c0_i32_0 : i32, i32, i32
  }
}

</mosaic_0001>

<bundles_post_ra>
// kernel: tpu_custom_call.1
= control target key start
LH: loop header
LB: loop body
LE: loop exit
PB: predicated region body
PF: predicated region fallthrough
CT: control target
= control target key end

     0   :  { %s708_s0 = inlined_call_operand.vmem [shape: s32[2,8], index: 0, kind: input, shape index: {}]   ;;  %s709_s1 = inlined_call_operand.vmem [shape: f32[2,1,8], index: 1, kind: input, shape index: {}]   ;;  %s710_s2 = inlined_call_operand.vmem [shape: f32[64,1,32], index: 2, kind: input, shape index: {}]   ;;  %s711_s3 = inlined_call_operand.hbm [shape: f32[2,1,32], index: 3, kind: output, shape index: {}]  }
   0x1   :  { %s8_s14 = sshll.u32 %s708_s0, 4  ;;  %s9_s14 = int_to_ptr.vmem [resolvable:$true] %s8_s14 }
   0x2   :  { %s428_s15 = scalar_lea.vmem %s9_s14, 32  ;;  %p433_p1 = scmp.lt.s32.totalorder %s9_s14, %s9_s14 }
   0x3   :  { %p429_p0 = scmp.ne.s32.totalorder %s9_s14, %s428_s15  ;;  %p434_p2 = scmp.lt.s32.totalorder %s428_s15, %s428_s15 }
   0x5   :  { %p435_p3 = por %p434_p2, %p433_p1 }
   0x7   :  { %p436_p4 = pnand %p435_p3, %p429_p0 }
   0x9   :  { %439 = shalt.err (!%p436_p4)  }
   0xa   :  { %s538_s16 = smov [#allocation4]  }
   0xb   :  { %11 = dma.vmem_to_smem %s9_s14, 32, %s538_s16, [#allocation3] }
   0xc   :  { %500 = dma.done.wait [#allocation3], 32 }
   0xd   :  { %501 = vsyncadd [#allocation3], 4294967264 }
   0xe   :  { %13 = sfence }
   0xf   :  { %14 = vsyncpa [#allocation6], 0 }
  0x10   :  { %16 = vsyncpa [#allocation6 + $0x1], 0  ;;  %s564_s17 = smov 0   ;;  %s566_s18 = smov 0  }
  0x11   :  { %s568_s0 = smov 0   ;;  %s570_s19 = smov 0  }
  0x12   :  { %s572_s20 = smov 0   ;;  %s574_s21 = smov 0  }
  0x13   :  { %s576_s22 = smov 0   ;;  %s578_s23 = smov 0  }
  0x14 LB: > { %s340_s24 = sadd.s32 4294967295, %s536_s23   ;;  %s341_s25 = sadd.s32 4294967294, %s536_s23   ;;  %s536_s23 = sphi %s578_s23, %s22_s23   ;;  %s532_s22 = sphi %s576_s22, %s720_s22   ;;  %s528_s21 = sphi %s574_s21, %s719_s21   ;;  %s524_s20 = sphi %s572_s20, %s718_s20   ;;  %s520_s19 = sphi %s570_s19, %s717_s19   ;;  %s516_s0 = sphi %s568_s0, %s716_s0   ;;  %s512_s18 = sphi %s566_s18, %s715_s18   ;;  %s508_s17 = sphi %s564_s17, %s714_s17  }
  0x15   : > { %s31_s26 = sadd.s32 1, %s528_s21  ;;  %s34_s27 = sadd.s32 1, %s532_s22 }
  0x16   : > { %p32_p5 = scmp.ge.s32.totalorder %s31_s26, 8  ;;  %p119_p6 = scmp.ne.s32.totalorder %s516_s0, %s512_s18 }
  0x17   : > { %p120_p7 = scmp.eq.s32.totalorder %s340_s24, 15  ;;  %p125_p9 = scmp.ne.s32.totalorder %s512_s18, %s508_s17 }
  0x18   : > { %s722_s26 = smov (%p32_p5, %s31_s26), 0  ;;  %s724_s27 = smov (!%p32_p5, %s34_s27), %s532_s22 }
  0x19   : > { %p613_p8 = por %p120_p7, %p119_p6  ;;  %p36_p10 = scmp.ge.s32.totalorder %s724_s27, 2 }
  0x1a   : > { %p126_p11 = scmp.eq.s32.totalorder %s341_s25, 15  ;;  %p346_p12 = scmp.ge.s32.totalorder %s536_s23, 1 }
  0x1b   : > { %p172_p13 = scmp.lt.s32.totalorder %s536_s23, 17  ;;  %s726_s27 = smov (%p36_p10, %s724_s27), 0 }
  0x1c   : > { %p623_p0 = por %p126_p11, %p125_p9  ;;  %s106_s30 = ssub.s32 %s532_s22, %s726_s27 }
  0x1d   : > { %p173_p1 = pnand %p346_p12, %p172_p13  ;;  %s109_s4 = sadd.s32 1, %s516_s0 }
  0x1e   : > { %p107_p2 = scmp.eq.s32.totalorder %s106_s30, 0  ;;  %s200_s6 = sand.u32 (!%p173_p1), 1, %s512_s18  }
  0x1f   : > { %176 = sbr.rel (%p173_p1) target bundleno = 283 (0x11b), region = 28  ;;  %p202_p3 = scmp.lt.s32.totalorder (!%p173_p1), %s524_s20, 1 }
  0x20   : > { %s631_s5 = scalar_select %p107_p2, %s516_s0, %s109_s4  }
  0x21   : > { %s205_s7 = sshra.s32 (!%p173_p1), %s520_s19, 7  ;;  %s210_s10 = sand.u32 (!%p173_p1), 127, %s520_s19 }
  0x22   : > { %s207_s9 = sadd.s32 (!%p173_p1), %s524_s20, %s205_s7  ;;  %s647_s4 = scalar_lea.vmem (!%p173_p1), [#allocation5], %s200_s6 }
  0x23   : > { %s347_s14 = sshll.u32 (!%p173_p1), %s207_s9, 7  ;;  %p348_p5 = scmp.ne.s32.totalorder (!%p173_p1), %s520_s19, 0 }
  0x24   : > { %s211_s15 = sadd.s32 (!%p173_p1), %s347_s14, %s210_s10 }
  0x25   : > { %s212_s16 = sld [smem:[#allocation4 + %s211_s15]] (!%p173_p1) }
  0x26   : > { %s203_s8 = scalar_select %p202_p3, %s524_s20, 1 }
  0x27   : > { %vm228_vm0 = vcmask (!%p348_p5), 253952   ;;  %v539_v0 = vmov (!%p348_p5), 0.0  }
  0x28   : > { %s204_s13 = scalar_lea.vmem %s709_s1, %s203_s8  ;;  %227 = sbr.rel (%p348_p5) target bundleno = 47 (0x2f), region = 32  ;;  %229 = vst.msk [vmem:[#allocation2] sm:$0x1] (!%p348_p5), %vm228_vm0, %v539_v0 }
  0x2b   : > { %p213_p4 = scmp.lt.s32.totalorder %s212_s16, 63 }
  0x2d   : > { %s728_s16 = smov (!%p213_p4, %s212_s16), 63 }
  0x2e   : > { %s215_s30 = scalar_lea.vmem %s710_s2, %s728_s16 }
  0x2f PF: > { %v230_v1 = vld [vmem:[#allocation2] sm:$0x1]  ;;  %vm233_vm1 = vcmask 253952   ;;  %p349_p6 = scmp.ne.s32.totalorder %s520_s19, 7 }
  0x30   : > { %v231_v2 = vld [vmem:[%s215_s30] sm:$0x1]  ;;  %vm240_vm2 = vcmask (!%p349_p6), 57344  }
  0x31   : > { %v232_v3 = vadd.f32 %v231_v2, %v230_v1  ;;  %238 = sbr.rel (%p349_p6) target bundleno = 259 (0x103), region = 36  ;;  %v239_v4 = vld [vmem:[%s204_s13] sm:$0x1] (!%p349_p6) }
  0x32   : > { %v241_v5 = vsel (!%p349_p6), %vm240_vm2, %v239_v4, 0.0 }
  0x33   : > { %234 = vst.msk [vmem:[#allocation2] sm:$0x1] %vm233_vm1, %v232_v3  ;;  %242 = vadd.xlane.f32.xlu0 (!%p349_p6), %v241_v5 }
  0x3a   : > { %v251_v13 = vld [vmem:[#allocation2] sm:$0x1] }
  0xc0   : > { %v243_v6 = vpop.xlane.xlu0 %242 }
  0xc1   : > { %v244_v7 = vrot.slane %v243_v6, 4 }
  0xc3   : > { %v245_v8 = vadd.f32 %v244_v7, %v243_v6 }
  0xc5   : > { %v246_v9 = vrot.slane %v245_v8, 2 }
  0xc7   : > { %v247_v10 = vadd.f32 %v246_v9, %v245_v8 }
  0xc9   : > { %v248_v11 = vrot.slane %v247_v10, 1 }
  0xcb   : > { %v249_v12 = vadd.f32 %v248_v11, %v247_v10 }
  0xcd   : > { %353 = vpush %v249_v12 }
  0xfe   : > { %s354_s7 = spop %353 }
  0xff   : > { %v252_v14 = vstv %s354_s7 }
 0x100   : > { %v253_v15 = vmul.f32 %v252_v14, %v251_v13 }
 0x102   : > { %254 = vst.msk [vmem:[%s647_s4] sm:$0x1] %vm233_vm1, %v253_v15 }
 0x103 PF: > { %s350_s19 = sshll.u32 %s524_s20, 4  ;;  %s268_s11 = sshll.u32 %s647_s4, 4  ;;  %s269_s11 = int_to_ptr.vmem [resolvable:$true] %s268_s11 }
 0x104   : > { %s658_s10 = scalar_lea.hbm %s711_s3, %s350_s19  ;;  %s256_s12 = scalar_lea.sflag [#allocation6], %s200_s6 }
 0x105   : > { %s440_s13 = scalar_lea.vmem %s269_s11, 16  ;;  %s540_s14 = smov [#allocation5]  }
 0x106   : > { %p441_p7 = scmp.ne.s32.totalorder %s269_s11, %s440_s13  ;;  %s444_s15 = sshll.u32 %s540_s14, 4  ;;  %s445_s15 = int_to_ptr.vmem [resolvable:$false] %s444_s15 }
 0x107   : > { %s446_s16 = scalar_lea.vmem %s445_s15, 32  ;;  %p447_p11 = scmp.lt.s32.totalorder %s269_s11, %s445_s15 }
 0x108   : > { %p442_p9 = pnand %p441_p7, %p613_p8  ;;  %p448_p12 = scmp.lt.s32.totalorder %s446_s16, %s440_s13 }
 0x10a   : > { %p443_p10 = pneg %p442_p9  ;;  %p449_p13 = por %p448_p12, %p447_p11 }
 0x10c   : > { %p450_p1 = pnand %p449_p13, %p443_p10 }
 0x10e   : > { %453 = shalt.err (!%p450_p1)
}
 0x10f   : > { %s454_s20 = scalar_lea.hbm %s658_s10, 16  ;;  %s458_s25 = scalar_lea.hbm %s711_s3, 32 }
 0x110   : > { %p455_p2 = scmp.ne.s32.totalorder %s658_s10, %s454_s20  ;;  %p459_p5 = scmp.lt.u32.totalorder %s658_s10, %s711_s3 }
 0x111   : > { %p460_p6 = scmp.lt.u32.totalorder %s458_s25, %s454_s20  ;;  %p462_p9 = scmp.lt.u32.totalorder %s454_s20, %s658_s10 }
 0x112   : > { %p456_p3 = pnand %p455_p2, %p613_p8 }
 0x113   : > { %p461_p7 = por %p460_p6, %p459_p5 }
 0x114   : > { %p457_p4 = pneg %p456_p3 }
 0x115   : > { %p463_p10 = por %p462_p9, %p461_p7 }
 0x117   : > { %p464_p11 = pnand %p463_p10, %p457_p4 }
 0x119   : > { %467 = shalt.err (!%p464_p11)
}
 0x11a   : > { %355 = dma.vmem_to_hbm [thread:$0]  (%p613_p8), %s269_s11, 16, %s658_s10, %s256_s12  }
 0x11b PF: > { %p361_p12 = scmp.ge.s32.totalorder %s536_s23, 2  ;;  %s280_s7 = sand.u32 1, %s508_s17  }
 0x11c   : > { %s281_s19 = scalar_lea.sflag [#allocation6], %s280_s7 }
 0x11d   : > { %p358_p13 = pnand %p361_p12, %p623_p0 }
 0x11f   : > { %503 = dma.done.wait (!%p358_p13), %s281_s19, 16  }
 0x120   : > { %505 = vsyncadd (!%p358_p13), %s281_s19, 4294967280  ;;  %s22_s23 = sadd.s32 1, %s536_s23   ;;  %s714_s17 = smov %s512_s18 }
 0x121   : > { %p19_p1 = scmp.ge.s32.totalorder %s22_s23, 18   ;;  %s715_s18 = smov %s516_s0 }
 0x122   : > { %s716_s0 = smov %s631_s5  ;;  %s717_s19 = smov %s528_s21 }
 0x123   : > { %s718_s20 = smov %s532_s22  ;;  %s719_s21 = smov %s722_s26 }
 0x124   : > { %s720_s22 = smov %s726_s27  ;;  %21 = sbr.rel (!%p19_p1) target bundleno = 20 (0x14), region = 74 }
 0x12b   :  { %285 = vsyncpa [#allocation6], 1 }
 0x12c   :  { %287 = vsyncpa [#allocation6 + $0x1], 1 }

</bundles_post_ra>
